<compile_context>
chip_gen: v7x
topology: tpu7x:2x2x1
jax: 0.10.0
libtpu: 0.0.40
codegen_flags: <defaults>
</compile_context>

<pallas_src>
import functools

import jax
import jax.numpy as jnp
from jax.experimental import pallas as pl
from jax.experimental.pallas import tpu as pltpu

IGNORE_INDEX = 255
_NEG_INF = float("-inf")
# ~2 MiB of f32 working set per logits block: past break-even on v5e/v6e/v7x and
# (with double-buffering + temporaries) far below every generation's VMEM.
_DEFAULT_TARGET_BLOCK_BYTES = 2 * 1024 * 1024


def _ce2d_kernel(logits_ref, target_ref, out_ref, sum_s, cnt_s, max_s,
                 *, hw, tile_p, n_blk_per):
    # grid = (N, P, n_blk_per): batch and pixel-split axes are "parallel",
    # the pixel-block axis (last) is the "arbitrary" reduction axis.
    j = pl.program_id(2)

    @pl.when(j == 0)
    def _init():
        sum_s[...] = jnp.zeros_like(sum_s)
        cnt_s[...] = jnp.zeros_like(cnt_s)
        max_s[...] = jnp.full_like(max_s, _NEG_INF)

    x = logits_ref[0].astype(jnp.float32)     # (C, TILE_P): classes on sublanes
    t = target_ref[0].astype(jnp.int32)       # (1, TILE_P): lane-dense targets

    # numerically stable log-sum-exp over classes (sublane reduce)
    m = jnp.max(x, axis=0, keepdims=True)                                    # (1, TILE_P)
    lse = m + jnp.log(jnp.sum(jnp.exp(x - m), axis=0, keepdims=True))        # (1, TILE_P)

    # logit at the target class via a one-hot masked sublane sum
    cls = jax.lax.broadcasted_iota(jnp.int32, x.shape, 0)                    # (C, TILE_P)
    tgt_logit = jnp.sum(jnp.where(cls == t, x, 0.0), axis=0, keepdims=True)  # (1, TILE_P)

    # LOGICAL pixel-block index (the DMA index_map clamps redundant blocks, but the
    # mask below is computed from the logical index so they contribute exactly zero).
    blk = pl.program_id(1) * n_blk_per + j
    pix = blk * tile_p + jax.lax.broadcasted_iota(jnp.int32, t.shape, 1)     # global pixel idx
    in_range = pix < hw                       # masks ragged tail + redundant blocks
    valid = (t != IGNORE_INDEX) & in_range

    # lane-wide running partials (VMEM scratch, resident across the reduction axis)
    sum_s[...] += jnp.where(valid, lse - tgt_logit, 0.0)
    cnt_s[...] += valid.astype(jnp.float32)
    # running max of the raw target (includes ignore_index pixels, like torch.max)
    max_s[...] = jnp.maximum(
        max_s[...], jnp.where(in_range, t.astype(jnp.float32), _NEG_INF))

    @pl.when(j == pl.num_programs(2) - 1)
    def _finalize():
        s = jnp.sum(sum_s[...], axis=-1, keepdims=True)   # (1, 1) loss partial
        c = jnp.sum(cnt_s[...], axis=-1, keepdims=True)   # (1, 1) valid count
        mx = jnp.max(max_s[...], axis=-1, keepdims=True)  # (1, 1) max(target)
        out_ref[0, 0] = jnp.concatenate([s, c, mx], axis=0)   # (3, 1)


def _choose_tiling(C, hw, target_block_bytes):
    """Pick (tile_p, n_blk, p_split, n_blk_per) so each logits block is ~target bytes."""
    if hw < 128:
        # Tiny image: one block equal to the full pixel extent (legal BlockSpec).
        return hw, 1, 1, 1
    cap = max(128, (target_block_bytes // (4 * C)) // 128 * 128)
    tile_p = min(cap, (hw // 128) * 128)      # always a 128-lane multiple, <= hw
    n_blk = pl.cdiv(hw, tile_p)
    p_split = 2 if n_blk >= 2 else 1          # give both v7x TensorCores pixel work
    n_blk_per = pl.cdiv(n_blk, p_split)
    return tile_p, n_blk, p_split, n_blk_per


@functools.partial(jax.jit, static_argnames=("tile_p", "n_blk", "p_split", "n_blk_per"))
def _ce2d_pallas(output, target, *, tile_p, n_blk, p_split, n_blk_per):
    N, C, H, W = output.shape
    hw = H * W

    logits = output.reshape(N, C, hw)          # free view of NCHW (no transpose)
    tgt = target.reshape(N, 1, hw)             # keep native int dtype (uint8/int8/int32)
    if not jnp.issubdtype(tgt.dtype, jnp.integer):
        tgt = tgt.astype(jnp.int32)

    kernel = functools.partial(_ce2d_kernel, hw=hw, tile_p=tile_p, n_blk_per=n_blk_per)

    def blk_index(i, p, j):
        b = p * n_blk_per + j
        if p_split * n_blk_per != n_blk:
            # clamp redundant logical blocks (n_blk not divisible by p_split) onto the
            # last real block; the kernel masks them out via the logical pixel index.
            b = jnp.minimum(b, n_blk - 1)
        return (i, 0, b)

    acc = pl.pallas_call(
        kernel,
        out_shape=jax.ShapeDtypeStruct((N, p_split, 3, 1), jnp.float32),
        grid_spec=pltpu.PrefetchScalarGridSpec(
            num_scalar_prefetch=0,
            grid=(N, p_split, n_blk_per),
            in_specs=[
                pl.BlockSpec((1, C, tile_p), blk_index),
                pl.BlockSpec((1, 1, tile_p), blk_index),
            ],
            out_specs=pl.BlockSpec((1, 1, 3, 1), lambda i, p, j: (i, p, 0, 0)),
            scratch_shapes=[
                pltpu.VMEM((1, tile_p), jnp.float32),   # loss partials
                pltpu.VMEM((1, tile_p), jnp.float32),   # valid counts
                pltpu.VMEM((1, tile_p), jnp.float32),   # running max(target)
            ],
        ),
        compiler_params=pltpu.CompilerParams(
            dimension_semantics=("parallel", "parallel", "arbitrary"),
            vmem_limit_bytes=48 * 1024 * 1024,
        ),
    )(logits, tgt)

    # reduction='mean' over non-ignored pixels (NaN if all ignored, like PyTorch).
    loss = jnp.sum(acc[:, :, 0, 0]) / jnp.sum(acc[:, :, 1, 0])
    tgt_max = jnp.max(acc[:, :, 2, 0])
    return loss, tgt_max


def cross_entropy_loss_2d(output, target, target_block_bytes=_DEFAULT_TARGET_BLOCK_BYTES):
    """output: (N, C, H, W) float logits; target: (N, H, W) int class ids."""
    N, C, H, W = output.shape
    hw = H * W
    tile_p, n_blk, p_split, n_blk_per = _choose_tiling(C, hw, target_block_bytes)

    loss, tgt_max = _ce2d_pallas(output, target, tile_p=tile_p, n_blk=n_blk,
                                 p_split=p_split, n_blk_per=n_blk_per)

    # Replicates the module's guard: `if torch.max(target) < 1: exit(-1)`.
    # max(target) is produced by the same streaming kernel (no extra HBM pass).
    if float(tgt_max) < 1:
        print("bad crop, exiting")
        raise SystemExit(-1)

    return loss


def _reference_ce2d(output, target):
    """Plain-JAX reference mirroring nn.CrossEntropyLoss(ignore_index=255, reduction='mean')."""
    N, C, H, W = output.shape
    x = jnp.transpose(output, (0, 2, 3, 1)).reshape(-1, C).astype(jnp.float32)
    t = target.reshape(-1).astype(jnp.int32)
    logp = jax.nn.log_softmax(x, axis=-1)
    valid = t != IGNORE_INDEX
    safe_t = jnp.where(valid, t, 0)
    nll = -jnp.take_along_axis(logp, safe_t[:, None], axis=-1)[:, 0]
    nll = jnp.where(valid, nll, 0.0)
    return jnp.sum(nll) / jnp.sum(valid.astype(jnp.float32))


if __name__ == "__main__":
    key = jax.random.PRNGKey(0)
    k1, k2, k3, k4, k5, k6, k7, k8, k9 = jax.random.split(key, 9)

    # Case 1: standard small shape (batch=2, channels=4, spatial=16x16) -> single block.
    N, C, H, W = 2, 4, 16, 16
    output = jax.random.normal(k1, (N, C, H, W), dtype=jnp.float32)
    target = jax.random.randint(k2, (N, H, W), 0, C, dtype=jnp.int32)
    target = jnp.where(jax.random.bernoulli(k3, 0.1, (N, H, W)), IGNORE_INDEX, target)

    loss = jax.block_until_ready(cross_entropy_loss_2d(output, target))
    ref = jax.block_until_ready(_reference_ce2d(output, target))
    assert jnp.allclose(loss, ref, rtol=1e-5, atol=1e-5), (loss, ref)

    # Case 2: force tiny 128-pixel blocks -> 3 blocks, 2-way core split, one redundant
    # (clamped + masked) logical block, multi-step accumulation.
    N2, C2, H2, W2 = 2, 4, 16, 24
    output2 = jax.random.normal(k4, (N2, C2, H2, W2), dtype=jnp.float32)
    target2 = jax.random.randint(k5, (N2, H2, W2), 0, C2, dtype=jnp.int32)
    target2 = jnp.where(jax.random.bernoulli(k6, 0.1, (N2, H2, W2)), IGNORE_INDEX, target2)

    loss2 = jax.block_until_ready(
        cross_entropy_loss_2d(output2, target2, target_block_bytes=128 * 4 * C2))
    ref2 = jax.block_until_ready(_reference_ce2d(output2, target2))
    assert jnp.allclose(loss2, ref2, rtol=1e-5, atol=1e-5), (loss2, ref2)

    # Case 3: bf16 logits + uint8 targets, H*W=150 not a multiple of 128 -> ragged
    # last block handled by the in-kernel pix<hw mask (no padding, no fallback).
    N3, C3, H3, W3 = 2, 4, 10, 15
    output3 = jax.random.normal(k7, (N3, C3, H3, W3), dtype=jnp.bfloat16)
    target3 = jax.random.randint(k8, (N3, H3, W3), 0, C3, dtype=jnp.int32).astype(jnp.uint8)
    target3 = jnp.where(jax.random.bernoulli(k9, 0.1, (N3, H3, W3)),
                        jnp.uint8(IGNORE_INDEX), target3)

    loss3 = jax.block_until_ready(cross_entropy_loss_2d(output3, target3))
    ref3 = jax.block_until_ready(_reference_ce2d(output3, target3))
    assert jnp.allclose(loss3, ref3, rtol=1e-4, atol=1e-5), (loss3, ref3)

    print("KERNEL_OK")
</pallas_src>

<mosaic_0001>
module attributes {stable_mosaic.version = 11 : i64} {
  func.func @_ce2d_kernel(%arg0: i32, %arg1: i32, %arg2: i32, %arg3: memref<1x4x256xf32, #tpu.memory_space<vmem>>, %arg4: memref<1x1x256xi32, #tpu.memory_space<vmem>>, %arg5: memref<1x1x3x1xf32, #tpu.memory_space<vmem>>, %arg6: memref<1x256xf32, #tpu.memory_space<vmem>>, %arg7: memref<1x256xf32, #tpu.memory_space<vmem>>, %arg8: memref<1x256xf32, #tpu.memory_space<vmem>>) attributes {dimension_semantics = [#tpu.dimension_semantics<parallel>, #tpu.dimension_semantics<parallel>, #tpu.dimension_semantics<arbitrary>], iteration_bounds = array<i64: 2, 1, 1>, scalar_prefetch = 0 : i64, scratch_operands = 3 : i64, tpu.core_type = #tpu.core_type<tc>, window_params = [{transform_indices = @transform_0, window_bounds = array<i64: 1, 4, 256>}, {transform_indices = @transform_1, window_bounds = array<i64: 1, 1, 256>}, {transform_indices = @transform_2, window_bounds = array<i64: 1, 1, 3, 1>}]} {
    %c0_i32 = arith.constant 0 : i32
    %0 = arith.cmpi eq, %arg2, %c0_i32 : i32
    %1 = arith.extui %0 : i1 to i32
    %c0_i32_0 = arith.constant 0 : i32
    %2 = arith.cmpi ne, %1, %c0_i32_0 : i32
    scf.if %2 {
      %cst_26 = arith.constant 0.000000e+00 : f32
      %54 = vector.broadcast %cst_26 : f32 to vector<1x256xf32>
      %c0_27 = arith.constant 0 : index
      %c0_28 = arith.constant 0 : index
      %55 = vector.load %arg6[%c0_27, %c0_28] : memref<1x256xf32, #tpu.memory_space<vmem>>, vector<1x256xf32>
      tpu.vector_store %arg6[%c0_27, %c0_28], %54 {strides = array<i32>} : memref<1x256xf32, #tpu.memory_space<vmem>>, vector<1x256xf32>,
      %cst_29 = arith.constant 0.000000e+00 : f32
      %56 = vector.broadcast %cst_29 : f32 to vector<1x256xf32>
      %c0_30 = arith.constant 0 : index
      %c0_31 = arith.constant 0 : index
      %57 = vector.load %arg7[%c0_30, %c0_31] : memref<1x256xf32, #tpu.memory_space<vmem>>, vector<1x256xf32>
      tpu.vector_store %arg7[%c0_30, %c0_31], %56 {strides = array<i32>} : memref<1x256xf32, #tpu.memory_space<vmem>>, vector<1x256xf32>,
      %cst_32 = arith.constant 0xFF800000 : f32
      %58 = vector.broadcast %cst_32 : f32 to vector<1x256xf32>
      %c0_33 = arith.constant 0 : index
      %c0_34 = arith.constant 0 : index
      %59 = vector.load %arg8[%c0_33, %c0_34] : memref<1x256xf32, #tpu.memory_space<vmem>>, vector<1x256xf32>
      tpu.vector_store %arg8[%c0_33, %c0_34], %58 {strides = array<i32>} : memref<1x256xf32, #tpu.memory_space<vmem>>, vector<1x256xf32>,
    } else {
    }
    %c0 = arith.constant 0 : index
    %c0_1 = arith.constant 0 : index
    %c0_2 = arith.constant 0 : index
    %3 = vector.load %arg3[%c0, %c0_1, %c0_2] : memref<1x4x256xf32, #tpu.memory_space<vmem>>, vector<1x4x256xf32>
    %4 = vector.shape_cast %3 : vector<1x4x256xf32> to vector<4x256xf32>
    %c0_3 = arith.constant 0 : index
    %c0_4 = arith.constant 0 : index
    %c0_5 = arith.constant 0 : index
    %5 = vector.load %arg4[%c0_3, %c0_4, %c0_5] : memref<1x1x256xi32, #tpu.memory_space<vmem>>, vector<1x1x256xi32>
    %6 = vector.shape_cast %5 : vector<1x1x256xi32> to vector<1x256xi32>
    %cst = arith.constant dense<0xFF800000> : vector<256xf32>
    %7 = vector.multi_reduction <maximumf>, %4, %cst [0] : vector<4x256xf32> to vector<256xf32>
    %8 = vector.shape_cast %7 : vector<256xf32> to vector<1x256xf32>
    %9 = vector.broadcast %8 : vector<1x256xf32> to vector<4x256xf32>
    %10 = arith.subf %4, %9 : vector<4x256xf32>
    %11 = math.exp %10 : vector<4x256xf32>
    %cst_6 = arith.constant dense<0.000000e+00> : vector<256xf32>
    %12 = vector.multi_reduction <add>, %11, %cst_6 [0] : vector<4x256xf32> to vector<256xf32>
    %13 = vector.shape_cast %12 : vector<256xf32> to vector<1x256xf32>
    %14 = math.log %13 : vector<1x256xf32>
    %15 = arith.addf %8, %14 : vector<1x256xf32>
    %16 = tpu.iota {dimensions = array<i32: 0>} : vector<4x256xi32>
    %17 = vector.broadcast %6 : vector<1x256xi32> to vector<4x256xi32>
    %18 = arith.cmpi eq, %16, %17 : vector<4x256xi32>
    %cst_7 = arith.constant 0.000000e+00 : f32
    %19 = vector.broadcast %cst_7 : f32 to vector<4x256xf32>
    %20 = arith.select %18, %4, %19 : vector<4x256xi1>, vector<4x256xf32>
    %cst_8 = arith.constant dense<0.000000e+00> : vector<256xf32>
    %21 = vector.multi_reduction <add>, %20, %cst_8 [0] : vector<4x256xf32> to vector<256xf32>
    %22 = vector.shape_cast %21 : vector<256xf32> to vector<1x256xf32>
    %c1_i32 = arith.constant 1 : i32
    %23 = arith.muli %arg1, %c1_i32 : i32
    %24 = arith.addi %23, %arg2 : i32
    %c256_i32 = arith.constant 256 : i32
    %25 = arith.muli %24, %c256_i32 : i32
    %26 = tpu.iota {dimensions = array<i32: 1>} : vector<1x256xi32>
    %27 = vector.broadcast %25 : i32 to vector<1x256xi32>
    %28 = arith.addi %27, %26 : vector<1x256xi32>
    %c256_i32_9 = arith.constant 256 : i32
    %29 = vector.broadcast %c256_i32_9 : i32 to vector<1x256xi32>
    %30 = arith.cmpi slt, %28, %29 : vector<1x256xi32>
    %c255_i32 = arith.constant 255 : i32
    %31 = vector.broadcast %c255_i32 : i32 to vector<1x256xi32>
    %32 = arith.cmpi ne, %6, %31 : vector<1x256xi32>
    %33 = arith.andi %32, %30 : vector<1x256xi1>
    %c0_10 = arith.constant 0 : index
    %c0_11 = arith.constant 0 : index
    %34 = vector.load %arg6[%c0_10, %c0_11] : memref<1x256xf32, #tpu.memory_space<vmem>>, vector<1x256xf32>
    %35 = arith.subf %15, %22 : vector<1x256xf32>
    %cst_12 = arith.constant 0.000000e+00 : f32
    %36 = vector.broadcast %cst_12 : f32 to vector<1x256xf32>
    %37 = arith.select %33, %35, %36 : vector<1x256xi1>, vector<1x256xf32>
    %38 = arith.addf %34, %37 : vector<1x256xf32>
    %c0_13 = arith.constant 0 : index
    %c0_14 = arith.constant 0 : index
    %39 = vector.load %arg6[%c0_13, %c0_14] : memref<1x256xf32, #tpu.memory_space<vmem>>, vector<1x256xf32>
    tpu.vector_store %arg6[%c0_13, %c0_14], %38 {strides = array<i32>} : memref<1x256xf32, #tpu.memory_space<vmem>>, vector<1x256xf32>,
    %c0_15 = arith.constant 0 : index
    %c0_16 = arith.constant 0 : index
    %40 = vector.load %arg7[%c0_15, %c0_16] : memref<1x256xf32, #tpu.memory_space<vmem>>, vector<1x256xf32>
    %41 = arith.extui %33 : vector<1x256xi1> to vector<1x256xi32>
    %42 = arith.sitofp %41 : vector<1x256xi32> to vector<1x256xf32>
    %43 = arith.addf %40, %42 : vector<1x256xf32>
    %c0_17 = arith.constant 0 : index
    %c0_18 = arith.constant 0 : index
    %44 = vector.load %arg7[%c0_17, %c0_18] : memref<1x256xf32, #tpu.memory_space<vmem>>, vector<1x256xf32>
    tpu.vector_store %arg7[%c0_17, %c0_18], %43 {strides = array<i32>} : memref<1x256xf32, #tpu.memory_space<vmem>>, vector<1x256xf32>,
    %c0_19 = arith.constant 0 : index
    %c0_20 = arith.constant 0 : index
    %45 = vector.load %arg8[%c0_19, %c0_20] : memref<1x256xf32, #tpu.memory_space<vmem>>, vector<1x256xf32>
    %46 = arith.sitofp %6 : vector<1x256xi32> to vector<1x256xf32>
    %cst_21 = arith.constant 0xFF800000 : f32
    %47 = vector.broadcast %cst_21 : f32 to vector<1x256xf32>
    %48 = arith.select %30, %46, %47 : vector<1x256xi1>, vector<1x256xf32>
    %49 = arith.maximumf %45, %48 : vector<1x256xf32>
    %c0_22 = arith.constant 0 : index
    %c0_23 = arith.constant 0 : index
    %50 = vector.load %arg8[%c0_22, %c0_23] : memref<1x256xf32, #tpu.memory_space<vmem>>, vector<1x256xf32>
    tpu.vector_store %arg8[%c0_22, %c0_23], %49 {strides = array<i32>} : memref<1x256xf32, #tpu.memory_space<vmem>>, vector<1x256xf32>,
    %c0_i32_24 = arith.constant 0 : i32
    %51 = arith.cmpi eq, %arg2, %c0_i32_24 : i32
    %52 = arith.extui %51 : i1 to i32
    %c0_i32_25 = arith.constant 0 : i32
    %53 = arith.cmpi ne, %52, %c0_i32_25 : i32
    scf.if %53 {
      %c0_26 = arith.constant 0 : index
      %c0_27 = arith.constant 0 : index
      %54 = vector.load %arg6[%c0_26, %c0_27] : memref<1x256xf32, #tpu.memory_space<vmem>>, vector<1x256xf32>
      %cst_28 = arith.constant dense<0.000000e+00> : vector<1xf32>
      %55 = vector.multi_reduction <add>, %54, %cst_28 [1] : vector<1x256xf32> to vector<1xf32>
      %56 = vector.shape_cast %55 : vector<1xf32> to vector<1x1xf32>
      %c0_29 = arith.constant 0 : index
      %c0_30 = arith.constant 0 : index
      %57 = vector.load %arg7[%c0_29, %c0_30] : memref<1x256xf32, #tpu.memory_space<vmem>>, vector<1x256xf32>
      %cst_31 = arith.constant dense<0.000000e+00> : vector<1xf32>
      %58 = vector.multi_reduction <add>, %57, %cst_31 [1] : vector<1x256xf32> to vector<1xf32>
      %59 = vector.shape_cast %58 : vector<1xf32> to vector<1x1xf32>
      %c0_32 = arith.constant 0 : index
      %c0_33 = arith.constant 0 : index
      %60 = vector.load %arg8[%c0_32, %c0_33] : memref<1x256xf32, #tpu.memory_space<vmem>>, vector<1x256xf32>
      %cst_34 = arith.constant dense<0xFF800000> : vector<1xf32>
      %61 = vector.multi_reduction <maximumf>, %60, %cst_34 [1] : vector<1x256xf32> to vector<1xf32>
      %62 = vector.shape_cast %61 : vector<1xf32> to vector<1x1xf32>
      %63 = tpu.concatenate %56, %59, %62 in 0 : vector<1x1xf32>, vector<1x1xf32>, vector<1x1xf32> -> vector<3x1xf32>
      %c0_35 = arith.constant 0 : index
      %c0_36 = arith.constant 0 : index
      %c0_37 = arith.constant 0 : index
      %c0_38 = arith.constant 0 : index
      %64 = vector.load %arg5[%c0_35, %c0_36, %c0_37, %c0_38] : memref<1x1x3x1xf32, #tpu.memory_space<vmem>>, vector<1x1x3x1xf32>
      %65 = vector.shape_cast %64 : vector<1x1x3x1xf32> to vector<3x1xf32>
      %66 = vector.shape_cast %63 : vector<3x1xf32> to vector<1x1x3x1xf32>
      tpu.vector_store %arg5[%c0_35, %c0_36, %c0_37, %c0_38], %66 {strides = array<i32>} : memref<1x1x3x1xf32, #tpu.memory_space<vmem>>, vector<1x1x3x1xf32>,
    } else {
    }
    return
  }
  func.func @transform_0(%arg0: i32, %arg1: i32, %arg2: i32) -> (i32, i32, i32) {
    %c1_i32 = arith.constant 1 : i32
    %0 = arith.muli %arg1, %c1_i32 : i32
    %1 = arith.addi %0, %arg2 : i32
    %c0_i32 = arith.constant 0 : i32
    %c0_i32_0 = arith.constant 0 : i32
    return %arg0, %c0_i32, %1 : i32, i32, i32
  }
  func.func @transform_1(%arg0: i32, %arg1: i32, %arg2: i32) -> (i32, i32, i32) {
    %c1_i32 = arith.constant 1 : i32
    %0 = arith.muli %arg1, %c1_i32 : i32
    %1 = arith.addi %0, %arg2 : i32
    %c0_i32 = arith.constant 0 : i32
    %c0_i32_0 = arith.constant 0 : i32
    return %arg0, %c0_i32, %1 : i32, i32, i32
  }
  func.func @transform_2(%arg0: i32, %arg1: i32, %arg2: i32) -> (i32, i32, i32, i32) {
    %c0_i32 = arith.constant 0 : i32
    %c0_i32_0 = arith.constant 0 : i32
    %c0_i32_1 = arith.constant 0 : i32
    return %arg0, %arg1, %c0_i32, %c0_i32_0 : i32, i32, i32, i32
  }
}

</mosaic_0001>

<bundles_post_ra>
// kernel: _ce2d_pallas.1
= control target key start
LH: loop header
LB: loop body
LE: loop exit
PB: predicated region body
PF: predicated region fallthrough
CT: control target
= control target key end

     0   :  { %s671_s9 = smov 0   ;;  %s673_s10 = smov 0   ;;  %s797_s0 = inlined_call_operand.vmem [shape: f32[2,4,256], index: 0, kind: input, shape index: {}]   ;;  %s798_s1 = inlined_call_operand.vmem [shape: s32[2,1,256], index: 1, kind: input, shape index: {}]   ;;  %s799_s2 = inlined_call_operand.vmem [shape: f32[2,1,3,1], index: 2, kind: output, shape index: {}]  }
   0x1   :  { %s675_s11 = smov 0  }
   0x2 LB: > { %s31_s12 = sadd.s32 1, %s646_s10  ;;  %p584_p0 = scmp.ge.s32.totalorder %s650_s11, 1  ;;  %s650_s11 = sphi %s675_s11, %s12_s11   ;;  %s646_s10 = sphi %s673_s10, %s805_s10   ;;  %s642_s9 = sphi %s671_s9, %s804_s9  }
   0x3   : > { %p33_p1 = scmp.ge.s32.totalorder %s31_s12, 2  ;;  %p164_p2 = scmp.lt.s32.totalorder %s650_s11, 3 }
   0x5   : > { %s807_s12 = smov (%p33_p1, %s31_s12), 0  ;;  %p165_p3 = pnand %p584_p0, %p164_p2 }
   0x6   : > { %p204_p4 = scmp.lt.s32.totalorder (!%p165_p3), %s642_s9, 1  ;;  %v236_v0 = vlaneseq (!%p165_p3)  ;;  %v652_v3 = vmov (!%p165_p3), 1966171168   ;;  %v653_v5 = vmov (!%p165_p3), 0.0   ;;  %v654_v6 = vmov (!%p165_p3), -inf  }
   0x7   : > { %168 = sbr.rel (%p165_p3) target bundleno = 250 (0xfa), region = 28  ;;  %v336_v4 = vunpack.c.l.s4 (!%p165_p3), %v652_v3  ;;  %vm248_vm1 = vcmask (!%p165_p3), 1043456   ;;  %v655_v7 = vmov (!%p165_p3), 1   ;;  %vm434_vm5 = vcmask (!%p165_p3), 1040384  }
   0x8   : > { %vm691_vm0 = vcmp.lt.s32.totalorder (!%p165_p3), %v236_v0, 256  ;;  %v695_v2 = vshrl.u32 (!%p165_p3), %v236_v0, 7  ;;  %v334_v8 = vcombine.low (!%p165_p3), %v655_v7, %v655_v7  ;;  %vm481_vm8 = vcmask (!%p165_p3), 1041408  }
   0x9   : > { %240 = vst.msk [vmem:[#allocation2] sm:$0x3] (!%p165_p3), %vm691_vm0, %v653_v5  ;;  %241 = vst.msk [vmem:[#allocation3] sm:$0x3] (!%p165_p3), %vm691_vm0, %v653_v5  ;;  %v337_v9 = vunpack.c.0.s8 (!%p165_p3), %v336_v4  ;;  %vm483_vm9 = vcmask (!%p165_p3), 2048  }
   0xa   : > { %242 = vst.msk [vmem:[#allocation4] sm:$0x3] (!%p165_p3), %vm691_vm0, %v654_v6  ;;  %v712_v11 = vsub.s32 (!%p165_p3), 0, %v695_v2  ;;  %v720_v14 = vsub.s32 (!%p165_p3), 1, %v695_v2 }
   0xb   : > { %v715_v12 = vsub.s32 (!%p165_p3), %v337_v9, %v695_v2 }
   0xd   : > { %v341_v18 = vrot.slane (!%p165_p3), %v334_v8, %v715_v12 }
   0xe   : > { %s809_s9 = smov (!%p204_p4, %s642_s9), 1 }
   0xf   : > { %s587_s13 = sshll.u32 %s809_s9, 1  ;;  %s592_s14 = sshll.u32 %s809_s9, 3  ;;  %v348_v23 = vrot.slane %v341_v18, %v715_v12 }
  0x10   : > { %s222_s17 = scalar_lea.vmem %s798_s1, %s587_s13  ;;  %s211_s20 = scalar_lea.vmem %s797_s0, %s592_s14  ;;  %v379_v27 = vld [vmem:[#allocation3] sm:$0x3] }
  0x11   : > { %v244_v10 = vld [vmem:[%s222_s17] sm:$0x3]  ;;  %vm349_vm3 = vcmp.ne.s32.totalorder %v348_v23, 0  ;;  %v384_v33 = vld [vmem:[#allocation4] sm:$0x3]  ;;  %s588_s21 = sshll.u32 %s809_s9, 2 }
  0x12   : > { %v717_v13 = vld [vmem:[%s211_s20] sm:$0xff]  ;;  %v385_v15 = vcvt.s32.f32 %v244_v10  ;;  %vm331_vm2 = vcmp.ne.s32.totalorder %v244_v10, 255  ;;  %v298_v58 = vrot.slane %v244_v10, %v712_v11  ;;  %v302_v60 = vrot.slane %v244_v10, %v720_v14  ;;  %s231_s24 = scalar_lea.vmem %s799_s2, %s588_s21 }
  0x13   : > { %v724_v16 = vcombine.high %v717_v13, %v717_v13  ;;  %v249_v17 = vsel %vm248_vm1, %v717_v13, -inf  ;;  %vm734_vm4 = vmand %vm331_vm2, %vm349_vm3 }
  0x14   : > { %v250_v19 = vrot.slane %v249_v17, 4  ;;  %v390_v20 = vrot.slane %v385_v15, %v712_v11  ;;  %v394_v21 = vrot.slane %v385_v15, %v720_v14  ;;  %v589_v32 = vsel %vm734_vm4, 1.0, %v653_v5 }
  0x15   : > { %v256_v22 = vsel %vm248_vm1, %v724_v16, -inf  ;;  %v382_v35 = vadd.f32 %v589_v32, %v379_v27  ;;  %vm303_vm6 = vcmp.eq.s32.totalorder %v695_v2, %v298_v58  ;;  %vm304_vm7 = vcmp.eq.s32.totalorder %v695_v2, %v302_v60 }
  0x16   : > { %v251_v24 = vmax.f32 %v249_v17, %v250_v19  ;;  %v401_v25 = vcombine.low %v390_v20, %v394_v21  ;;  %v257_v26 = vrot.slane %v256_v22, 4  ;;  %v305_v61 = vsel %vm303_vm6, %v717_v13, 0.0 }
  0x17   : > { %383 = vst.msk [vmem:[#allocation3] sm:$0x3] %vm691_vm0, %v382_v35  ;;  %v306_v3 = vsel %vm304_vm7, %v724_v16, 0.0  ;;  %v307_v5 = vsel %vm248_vm1, %v305_v61, 0.0 }
  0x18   : > { %v252_v28 = vrot.slane %v251_v24, 2  ;;  %v408_v30 = vrot.slane %v401_v25, %v715_v12  ;;  %v258_v31 = vmax.f32 %v256_v22, %v257_v26  ;;  %v314_v9 = vsel %vm248_vm1, %v306_v3, 0.0 }
  0x19   : > { %v308_v10 = vrot.slane %v307_v5, 4  ;;  %v315_v17 = vrot.slane %v314_v9, 4 }
  0x1a   : > { %v253_v34 = vmax.f32 %v251_v24, %v252_v28  ;;  %v415_v36 = vrot.slane %v408_v30, %v715_v12  ;;  %v259_v37 = vrot.slane %v258_v31, 2 }
  0x1b   : > { %v309_v19 = vadd.f32 %v308_v10, %v307_v5  ;;  %v316_v22 = vadd.f32 %v315_v17, %v314_v9 }
  0x1c   : > { %v254_v38 = vrot.slane %v253_v34, 1  ;;  %v417_v39 = vmax.f32 %v384_v33, %v415_v36  ;;  %v260_v40 = vmax.f32 %v258_v31, %v259_v37 }
  0x1d   : > { %v310_v24 = vrot.slane %v309_v19, 2  ;;  %v317_v26 = vrot.slane %v316_v22, 2 }
  0x1e   : > { %v744_v41 = vmax.f32 %v253_v34, %v254_v38  ;;  %v261_v42 = vrot.slane %v260_v40, 1  ;;  %418 = vst.msk [vmem:[#allocation4] sm:$0x3] %vm691_vm0, %v417_v39  ;;  %v440_v45 = vld [vmem:[#allocation3] sm:$0x3] }
  0x1f   : > { %v445_v46 = vrot.slane %v440_v45, %v712_v11  ;;  %v449_v47 = vrot.slane %v440_v45, %v720_v14  ;;  %v311_v27 = vadd.f32 %v310_v24, %v309_v19  ;;  %v318_v28 = vadd.f32 %v317_v26, %v316_v22 }
  0x20   : > { %v748_v43 = vmax.f32 %v260_v40, %v261_v42 }
  0x21   : > { %v452_v50 = vsel %vm434_vm5, %v445_v46, 0.0  ;;  %v453_v51 = vsel %vm434_vm5, %v449_v47, 0.0  ;;  %v312_v30 = vrot.slane %v311_v27, 1  ;;  %v319_v31 = vrot.slane %v318_v28, 1  ;;  %v351_v46 = vld [vmem:[#allocation2] sm:$0x3] }
  0x22   : > { %v265_v44 = vcombine.low %v744_v41, %v748_v43  ;;  %v454_v54 = vadd.f32 %v453_v51, %v452_v50 }
  0x23   : > { %v313_v34 = vadd.f32 %v312_v30, %v311_v27  ;;  %v320_v38 = vadd.f32 %v319_v31, %v318_v28 }
  0x24   : > { %v267_v48 = vsub.f32 %v717_v13, %v265_v44  ;;  %455 = vadd.xlane.f32.xlu0 %v454_v54 }
  0x25   : > { %v457_v49 = vld [vmem:[#allocation4] sm:$0x3] }
  0x26   : > { %v268_v52 = vmul.f32 1.442695, %v267_v48  ;;  %v462_v53 = vrot.slane %v457_v49, %v712_v11  ;;  %v466_v55 = vrot.slane %v457_v49, %v720_v14 }
  0x28   : > { %622 = vpow2.f32 %v268_v52  ;;  %v469_v56 = vsel %vm434_vm5, %v462_v53, -inf  ;;  %v470_v57 = vsel %vm434_vm5, %v466_v55, -inf }
  0x29   : > { %v471_v59 = vmax.f32 %v469_v56, %v470_v57 }
  0x2b   : > { %472 = vmax.xlane.f32.xlu0 %v471_v59 }
  0x32   : > { %v623_v62 = vpop.eup %622 }
  0x33   : > { %v271_v63 = vcombine.high %v623_v62, %v623_v62  ;;  %v273_v0 = vsel %vm248_vm1, %v623_v62, 0.0 }
  0x34   : > { %v274_v4 = vrot.slane %v273_v0, 4 }
  0x35   : > { %v280_v6 = vsel %vm248_vm1, %v271_v63, 0.0 }
  0x36   : > { %v275_v7 = vadd.f32 %v274_v4, %v273_v0  ;;  %v281_v8 = vrot.slane %v280_v6, 4 }
  0x38   : > { %v276_v15 = vrot.slane %v275_v7, 2  ;;  %v282_v2 = vadd.f32 %v281_v8, %v280_v6 }
  0x3a   : > { %v277_v13 = vadd.f32 %v276_v15, %v275_v7  ;;  %v283_v18 = vrot.slane %v282_v2, 2 }
  0x3c   : > { %v278_v20 = vrot.slane %v277_v13, 1  ;;  %v284_v21 = vadd.f32 %v283_v18, %v282_v2 }
  0x3e   : > { %v279_v16 = vadd.f32 %v278_v20, %v277_v13  ;;  %v285_v23 = vrot.slane %v284_v21, 1 }
  0x40   : > { %v286_v25 = vadd.f32 %v285_v23, %v284_v21  ;;  %624 = vlog2.f32 %v279_v16 }
  0x42   : > { %626 = vlog2.f32 %v286_v25 }
  0x4a   : > { %v625_v32 = vpop.eup %624 }
  0x4b   : > { %v288_v33 = vmul.f32 0.6931472, %v625_v32 }
  0x4c   : > { %v627_v35 = vpop.eup %626 }
  0x4d   : > { %v290_v36 = vmul.f32 0.6931472, %v627_v35  ;;  %v291_v37 = vadd.f32 %v288_v33, %v744_v41 }
  0x4f   : > { %v292_v39 = vadd.f32 %v290_v36, %v748_v43  ;;  %v352_v40 = vsub.f32 %v291_v37, %v313_v34 }
  0x51   : > { %v353_v42 = vsub.f32 %v292_v39, %v320_v38 }
  0x53   : > { %v356_v44 = vcombine.low %v352_v40, %v353_v42 }
  0x55   : > { %v363_v45 = vrot.slane %v356_v44, %v715_v12 }
  0x57   : > { %v370_v47 = vrot.slane %v363_v45, %v715_v12 }
  0x59   : > { %v372_v48 = vsel %vm734_vm4, %v370_v47, 0.0 }
  0x5a   : > { %v373_v49 = vadd.f32 %v372_v48, %v351_v46 }
  0x5c   : > { %378 = vst.msk [vmem:[#allocation2] sm:$0x3] %vm691_vm0, %v373_v49 }
  0x63   : > { %v422_v41 = vld [vmem:[#allocation2] sm:$0x3] }
  0x64   : > { %v427_v50 = vrot.slane %v422_v41, %v712_v11  ;;  %v431_v43 = vrot.slane %v422_v41, %v720_v14 }
  0x66   : > { %v435_v51 = vsel %vm434_vm5, %v427_v50, 0.0  ;;  %v436_v52 = vsel %vm434_vm5, %v431_v43, 0.0 }
  0x67   : > { %v437_v53 = vadd.f32 %v436_v52, %v435_v51 }
  0x69   : > { %438 = vadd.xlane.f32.xlu1 %v437_v53 }
  0xb1   : > { %v456_v54 = vpop.xlane.xlu0 %455 }
  0xb2   : > { %v475_v55 = vrot.slane %v456_v54, 7 }
  0xb8   : > { %v473_v12 = vpop.xlane.xlu0 %472 }
  0xb9   : > { %v478_v29 = vrot.slane %v473_v12, 6 }
  0xf6   : > { %v439_v1 = vpop.xlane.xlu1 %438 }
  0xf7   : > { %v480_v11 = vsel %vm434_vm5, %v439_v1, %v475_v55 }
  0xf8   : > { %v482_v14 = vsel %vm481_vm8, %v480_v11, %v478_v29 }
  0xf9   : > { %484 = vst.msk [vmem:[%s231_s24] sm:$0x7] %vm483_vm9, %v482_v14 }
  0xfa PF: > { %s12_s11 = sadd.s32 1, %s650_s11   ;;  %s804_s9 = smov %s646_s10 }
  0xfb   : > { %p9_p5 = scmp.ge.s32.totalorder %s12_s11, 4   ;;  %s805_s10 = smov %s807_s12 }
  0xfd   :  { %11 = sbr.rel (!%p9_p5) target bundleno = 2 (0x2), region = 69 }

</bundles_post_ra>
